<compile_context>
chip_gen: v5e
topology: v5e:2x2
jax: 0.10.0
libtpu: 0.0.40
codegen_flags: <defaults>
</compile_context>

<pallas_src>
from functools import partial

import jax
import jax.numpy as jnp
from jax.experimental import pallas as pl
from jax.experimental.pallas import tpu as pltpu


_SQRT_2_OVER_PI = 0.7978845608028654


def _gelu_tanh(v):
    # TODO(synk): PyTorch nn.GELU() default is the exact erf-based GELU; we use the
    # tanh approximation (guaranteed Mosaic lowering via EUP tanh, ~1e-3 max abs diff).
    return 0.5 * v * (1.0 + jnp.tanh(_SQRT_2_OVER_PI * (v + 0.044715 * v * v * v)))


def _mlp_kernel(*refs, apply_dropout):
    if apply_dropout:
        x_ref, w1_ref, b1_ref, w2_ref, b2_ref, m1_ref, m2_ref, o_ref = refs
    else:
        x_ref, w1_ref, b1_ref, w2_ref, b2_ref, o_ref = refs
        m1_ref = m2_ref = None

    # fc1 + bias + GELU (MXU matmul, f32 accumulation; VPU/EUP elementwise).
    h = jnp.dot(x_ref[...], w1_ref[...], preferred_element_type=jnp.float32)
    h = h + b1_ref[...].astype(jnp.float32)
    h = _gelu_tanh(h)
    if apply_dropout:
        h = h * m1_ref[...].astype(jnp.float32)   # mask already scaled by 1/keep_prob

    # fc2 + bias.
    y = jnp.dot(h.astype(w2_ref.dtype), w2_ref[...],
                preferred_element_type=jnp.float32)
    y = y + b2_ref[...].astype(jnp.float32)
    if apply_dropout:
        y = y * m2_ref[...].astype(jnp.float32)

    o_ref[...] = y.astype(o_ref.dtype)


def mlp_pallas(x, w1, b1, w2, b2, *, drop_rate=0.0, training=False,
               dropout_key=None, dropout_masks=None, block_m=128):
    """Fused MLP forward. x: (..., C); w1: (C, H); b1: (H,); w2: (H, D); b2: (D,)."""
    C = x.shape[-1]
    H = w1.shape[1]
    D = w2.shape[1]
    assert w1.shape[0] == C and w2.shape[0] == H
    lead = x.shape[:-1]

    # Flatten all leading dims: full sublane utilization regardless of batch size.
    x2 = x.reshape(-1, C)
    M = x2.shape[0]

    tm = int(block_m)
    Mp = pl.cdiv(M, tm) * tm
    if Mp != M:
        x2 = jnp.pad(x2, ((0, Mp - M), (0, 0)))

    use_dropout = bool(training) and float(drop_rate) > 0.0
    keep_prob = 1.0 - float(drop_rate)

    inputs = [x2, w1, b1.reshape(1, H), w2, b2.reshape(1, D)]
    in_specs = [
        pl.BlockSpec((tm, C), lambda i: (i, 0)),   # streamed activation tiles
        pl.BlockSpec((C, H), lambda i: (0, 0)),    # weights stay resident in VMEM
        pl.BlockSpec((1, H), lambda i: (0, 0)),
        pl.BlockSpec((H, D), lambda i: (0, 0)),
        pl.BlockSpec((1, D), lambda i: (0, 0)),
    ]

    if use_dropout:
        if dropout_masks is not None:
            m1, m2 = dropout_masks
            m1 = m1.astype(jnp.float32)
            m2 = m2.astype(jnp.float32)
        else:
            if dropout_key is None:
                raise ValueError("training dropout needs dropout_key or dropout_masks")
            k1, k2 = jax.random.split(dropout_key)
            # TODO(synk): RNG stream differs from torch.rand; masks are i.i.d. Bernoulli(keep).
            m1 = jax.random.bernoulli(k1, keep_prob, (M, H)).astype(jnp.float32)
            m2 = jax.random.bernoulli(k2, keep_prob, (M, D)).astype(jnp.float32)
        # Fold the 1/keep_prob scale into the masks once (no per-grid-step VPU recompute).
        m1 = m1 * (1.0 / keep_prob)
        m2 = m2 * (1.0 / keep_prob)
        if Mp != M:
            m1 = jnp.pad(m1, ((0, Mp - M), (0, 0)))
            m2 = jnp.pad(m2, ((0, Mp - M), (0, 0)))
        inputs += [m1, m2]
        in_specs += [
            pl.BlockSpec((tm, H), lambda i: (i, 0)),
            pl.BlockSpec((tm, D), lambda i: (i, 0)),
        ]

    out2 = pl.pallas_call(
        partial(_mlp_kernel, apply_dropout=use_dropout),
        out_shape=jax.ShapeDtypeStruct((Mp, D), x.dtype),
        grid=(Mp // tm,),
        in_specs=in_specs,
        out_specs=pl.BlockSpec((tm, D), lambda i: (i, 0)),
        compiler_params=pltpu.CompilerParams(
            dimension_semantics=("parallel",),     # rows are independent -> v7x megacore
            vmem_limit_bytes=32 * 1024 * 1024,     # explicit; safe on v5e/v6e/v7x
        ),
    )(*inputs)

    if Mp != M:
        out2 = out2[:M]
    return out2.reshape(*lead, D)


class Mlp:
    """Mirror of the PyTorch Mlp module (fc1 -> GELU -> Dropout -> fc2 -> Dropout)."""

    def __init__(self, w1, b1, w2, b2, drop=0.0):
        self.w1, self.b1, self.w2, self.b2 = w1, b1, w2, b2
        self.drop = float(drop)
        self.training = False

    def __call__(self, x, *, dropout_key=None, dropout_masks=None):
        return mlp_pallas(x, self.w1, self.b1, self.w2, self.b2,
                          drop_rate=self.drop, training=self.training,
                          dropout_key=dropout_key, dropout_masks=dropout_masks)


if __name__ == "__main__":
    root = jax.random.PRNGKey(0)
    kx, kw1, kb1, kw2, kb2, kd1, kd2 = jax.random.split(root, 7)

    # (batch, tokens, in_features) with hidden_features = 2 * in_features.
    B, N, C, H = 2, 256, 128, 256
    x = jax.random.normal(kx, (B, N, C), jnp.float32)
    w1 = jax.random.normal(kw1, (C, H), jnp.float32) * (C ** -0.5)
    b1 = jax.random.normal(kb1, (H,), jnp.float32) * 0.02
    w2 = jax.random.normal(kw2, (H, C), jnp.float32) * (H ** -0.5)
    b2 = jax.random.normal(kb2, (C,), jnp.float32) * 0.02

    def ref_forward(xv, m1=None, m2=None, keep=1.0):
        h = xv.reshape(-1, C) @ w1 + b1
        h = _gelu_tanh(h)
        if m1 is not None:
            h = h * m1 / keep
        y = h @ w2 + b2
        if m2 is not None:
            y = y * m2 / keep
        return y.reshape(xv.shape[:-1] + (C,))

    # --- eval / drop=0 path (module defaults): fused fc1 -> GELU -> fc2 ---
    mlp = Mlp(w1, b1, w2, b2, drop=0.0)
    y = jax.block_until_ready(mlp(x))
    y_ref = ref_forward(x)
    assert y.shape == y_ref.shape
    # Tolerance allows for MXU default-precision f32 matmul vs the XLA reference.
    assert jnp.allclose(y, y_ref, atol=5e-2, rtol=5e-2), float(jnp.max(jnp.abs(y - y_ref)))

    # --- training path with dropout (explicit masks so the result is exactly checkable) ---
    drop = 0.25
    keep = 1.0 - drop
    M = B * N
    m1 = jax.random.bernoulli(kd1, keep, (M, H)).astype(jnp.float32)
    m2 = jax.random.bernoulli(kd2, keep, (M, C)).astype(jnp.float32)
    mlp_t = Mlp(w1, b1, w2, b2, drop=drop)
    mlp_t.training = True
    y_t = jax.block_until_ready(mlp_t(x, dropout_masks=(m1, m2)))
    y_t_ref = ref_forward(x, m1, m2, keep)
    assert jnp.allclose(y_t, y_t_ref, atol=5e-2, rtol=5e-2), \
        float(jnp.max(jnp.abs(y_t - y_t_ref)))

    print("KERNEL_OK")
</pallas_src>

<mosaic_0001>
module attributes {stable_mosaic.version = 11 : i64} {
  func.func @_mlp_kernel(%arg0: i32, %arg1: memref<128x128xf32, #tpu.memory_space<vmem>>, %arg2: memref<128x256xf32, #tpu.memory_space<vmem>>, %arg3: memref<1x256xf32, #tpu.memory_space<vmem>>, %arg4: memref<256x128xf32, #tpu.memory_space<vmem>>, %arg5: memref<1x128xf32, #tpu.memory_space<vmem>>, %arg6: memref<128x128xf32, #tpu.memory_space<vmem>>) attributes {dimension_semantics = [#tpu.dimension_semantics<parallel>], iteration_bounds = array<i64: 4>, scalar_prefetch = 0 : i64, scratch_operands = 0 : i64, tpu.core_type = #tpu.core_type<tc>, window_params = [{transform_indices = @transform_0, window_bounds = array<i64: 128, 128>}, {pipeline_mode = #tpu.pipeline_mode<synchronous>, transform_indices = @transform_1, window_bounds = array<i64: 128, 256>}, {pipeline_mode = #tpu.pipeline_mode<synchronous>, transform_indices = @transform_2, window_bounds = array<i64: 1, 256>}, {pipeline_mode = #tpu.pipeline_mode<synchronous>, transform_indices = @transform_3, window_bounds = array<i64: 256, 128>}, {pipeline_mode = #tpu.pipeline_mode<synchronous>, transform_indices = @transform_4, window_bounds = array<i64: 1, 128>}, {transform_indices = @transform_5, window_bounds = array<i64: 128, 128>}]} {
    %c0 = arith.constant 0 : index
    %c0_0 = arith.constant 0 : index
    %0 = vector.load %arg1[%c0, %c0_0] : memref<128x128xf32, #tpu.memory_space<vmem>>, vector<128x128xf32>
    %c0_1 = arith.constant 0 : index
    %c0_2 = arith.constant 0 : index
    %1 = vector.load %arg2[%c0_1, %c0_2] : memref<128x256xf32, #tpu.memory_space<vmem>>, vector<128x256xf32>
    %cst = arith.constant dense<0.000000e+00> : vector<128x256xf32>
    %2 = tpu.matmul %0, %1, %cst {dimension_numbers = #tpu.dot_dimension_numbers<[1], [0], [0], [1], [0, 0, 1, 1], [], []>} : vector<128x128xf32>, vector<128x256xf32>, vector<128x256xf32> -> vector<128x256xf32>
    %c0_3 = arith.constant 0 : index
    %c0_4 = arith.constant 0 : index
    %3 = vector.load %arg3[%c0_3, %c0_4] : memref<1x256xf32, #tpu.memory_space<vmem>>, vector<1x256xf32>
    %4 = vector.broadcast %3 : vector<1x256xf32> to vector<128x256xf32>
    %5 = arith.addf %2, %4 : vector<128x256xf32>
    %cst_5 = arith.constant 5.000000e-01 : f32
    %6 = vector.broadcast %cst_5 : f32 to vector<128x256xf32>
    %7 = arith.mulf %6, %5 : vector<128x256xf32>
    %cst_6 = arith.constant 4.471500e-02 : f32
    %8 = vector.broadcast %cst_6 : f32 to vector<128x256xf32>
    %9 = arith.mulf %8, %5 : vector<128x256xf32>
    %10 = arith.mulf %9, %5 : vector<128x256xf32>
    %11 = arith.mulf %10, %5 : vector<128x256xf32>
    %12 = arith.addf %5, %11 : vector<128x256xf32>
    %cst_7 = arith.constant 0.797884583 : f32
    %13 = vector.broadcast %cst_7 : f32 to vector<128x256xf32>
    %14 = arith.mulf %13, %12 : vector<128x256xf32>
    %15 = math.tanh %14 : vector<128x256xf32>
    %cst_8 = arith.constant 1.000000e+00 : f32
    %16 = vector.broadcast %cst_8 : f32 to vector<128x256xf32>
    %17 = arith.addf %16, %15 : vector<128x256xf32>
    %18 = arith.mulf %7, %17 : vector<128x256xf32>
    %c0_9 = arith.constant 0 : index
    %c0_10 = arith.constant 0 : index
    %19 = vector.load %arg4[%c0_9, %c0_10] : memref<256x128xf32, #tpu.memory_space<vmem>>, vector<256x128xf32>
    %cst_11 = arith.constant dense<0.000000e+00> : vector<128x128xf32>
    %20 = tpu.matmul %18, %19, %cst_11 {dimension_numbers = #tpu.dot_dimension_numbers<[1], [0], [0], [1], [0, 0, 1, 1], [], []>} : vector<128x256xf32>, vector<256x128xf32>, vector<128x128xf32> -> vector<128x128xf32>
    %c0_12 = arith.constant 0 : index
    %c0_13 = arith.constant 0 : index
    %21 = vector.load %arg5[%c0_12, %c0_13] : memref<1x128xf32, #tpu.memory_space<vmem>>, vector<1x128xf32>
    %22 = vector.broadcast %21 : vector<1x128xf32> to vector<128x128xf32>
    %23 = arith.addf %20, %22 : vector<128x128xf32>
    %c0_14 = arith.constant 0 : index
    %c0_15 = arith.constant 0 : index
    %24 = vector.load %arg6[%c0_14, %c0_15] : memref<128x128xf32, #tpu.memory_space<vmem>>, vector<128x128xf32>
    tpu.vector_store %arg6[%c0_14, %c0_15], %23 {strides = array<i32>} : memref<128x128xf32, #tpu.memory_space<vmem>>, vector<128x128xf32>,
    return
  }
  func.func @transform_0(%arg0: i32) -> (i32, i32) {
    %c0_i32 = arith.constant 0 : i32
    %c0_i32_0 = arith.constant 0 : i32
    return %arg0, %c0_i32 : i32, i32
  }
  func.func @transform_1(%arg0: i32) -> (i32, i32) {
    %c0_i32 = arith.constant 0 : i32
    %c0_i32_0 = arith.constant 0 : i32
    %c0_i32_1 = arith.constant 0 : i32
    return %c0_i32, %c0_i32_0 : i32, i32
  }
  func.func @transform_2(%arg0: i32) -> (i32, i32) {
    %c0_i32 = arith.constant 0 : i32
    %c0_i32_0 = arith.constant 0 : i32
    %c0_i32_1 = arith.constant 0 : i32
    return %c0_i32, %c0_i32_0 : i32, i32
  }
  func.func @transform_3(%arg0: i32) -> (i32, i32) {
    %c0_i32 = arith.constant 0 : i32
    %c0_i32_0 = arith.constant 0 : i32
    %c0_i32_1 = arith.constant 0 : i32
    return %c0_i32, %c0_i32_0 : i32, i32
  }
  func.func @transform_4(%arg0: i32) -> (i32, i32) {
    %c0_i32 = arith.constant 0 : i32
    %c0_i32_0 = arith.constant 0 : i32
    %c0_i32_1 = arith.constant 0 : i32
    return %c0_i32, %c0_i32_0 : i32, i32
  }
  func.func @transform_5(%arg0: i32) -> (i32, i32) {
    %c0_i32 = arith.constant 0 : i32
    %c0_i32_0 = arith.constant 0 : i32
    return %arg0, %c0_i32 : i32, i32
  }
}

</mosaic_0001>

<bundles_post_ra>
// kernel: tpu_custom_call.1
= control target key start
LH: loop header
LB: loop body
LE: loop exit
PB: predicated region body
PF: predicated region fallthrough
CT: control target
= control target key end

     0   :  { %10 = vsyncpa [#allocation3], 0  ;;  %s1844_s0 = inlined_call_operand.hbm [shape: f32[512,128], index: 0, kind: input, shape index: {}]   ;;  %s1845_s1 = inlined_call_operand.hbm [shape: f32[128,256], index: 1, kind: input, shape index: {}]   ;;  %s1846_s2 = inlined_call_operand.hbm [shape: f32[1,256], index: 2, kind: input, shape index: {}]   ;;  %s1847_s3 = inlined_call_operand.hbm [shape: f32[256,128], index: 3, kind: input, shape index: {}]   ;;  %s1848_s4 = inlined_call_operand.vmem [shape: f32[1,128], index: 4, kind: input, shape index: {}]   ;;  %s1849_s5 = inlined_call_operand.hbm [shape: f32[512,128], index: 5, kind: output, shape index: {}]  }
   0x1   :  { %12 = vsyncpa [#allocation3 + $0x1], 0 }
   0x2   :  { %13 = vsyncpa [#allocation6], 0 }
   0x3   :  { %14 = vsyncpa [#allocation9], 0 }
   0x4   :  { %15 = vsyncpa [#allocation4], 0 }
   0x5   :  { %17 = vsyncpa [#allocation4 + $0x1], 0  ;;  %s1472_s18 = smov 0   ;;  %s1474_s19 = smov 0  }
   0x6   :  { %s1476_s20 = smov 0   ;;  %s1478_s21 = smov 0  }
   0x7 LB: > { %s1493_s22 = sadd.s32 4294967295, %s1431_s21   ;;  %s1067_s23 = sadd.s32 4294967294, %s1431_s21   ;;  %s1431_s21 = sphi %s1478_s21, %s1861_s21   ;;  %s1427_s20 = sphi %s1476_s20, %s1860_s20   ;;  %s1423_s19 = sphi %s1474_s19, %s1859_s19   ;;  %s1419_s18 = sphi %s1472_s18, %s1858_s18  }
   0x8   : > { %p43_p0 = scmp.ne.s32.totalorder %s1423_s19, %s1419_s18  ;;  %p44_p1 = scmp.eq.s32.totalorder %s1493_s22, 0 }
   0x9   : > { %p151_p2 = scmp.eq.s32.totalorder %s1493_s22, 3  ;;  %p157_p3 = scmp.eq.s32.totalorder %s1067_s23, 3 }
   0xa   : > { %p1502_p4 = por %p44_p1, %p43_p0  ;;  %p1068_p5 = scmp.ge.s32.totalorder %s1431_s21, 1 }
   0xb   : > { %p1507_p6 = por %p157_p3, %p43_p0  ;;  %p164_p7 = scmp.lt.s32.totalorder %s1431_s21, 5 }
   0xc   : > { %s175_s28 = sshll.u32 %s1845_s1, 4  ;;  %s1433_s30 = smov [#allocation5]   ;;  %s176_s28 = int_to_ptr.hbm [resolvable:$true] %s175_s28 }
   0xd   : > { %p1515_p8 = pnand %p1068_p5, %p164_p7  ;;  %s177_s6 = sshll.u32 %s1433_s30, 4  ;;  %s178_s6 = int_to_ptr.vmem [resolvable:$true] %s177_s6 }
   0xe   : > { %s190_s10 = sshll.u32 %s1846_s2, 4  ;;  %s1434_s11 = smov 256   ;;  %s191_s10 = int_to_ptr.hbm [resolvable:$true] %s190_s10 }
   0xf   : > { %p1105_p9 = pneg %p1515_p8  ;;  %s1435_s12 = smov 16  }
  0x10   : > { %s1436_s13 = smov [#allocation7]   ;;  %s201_s17 = sshll.u32 %s1847_s3, 4  ;;  %s202_s17 = int_to_ptr.hbm [resolvable:$true] %s201_s17 }
  0x11   : > { %p1523_p10 = pnand %p1105_p9, %p44_p1  ;;  %s192_s14 = sshll.u32 %s1436_s13, 4  ;;  %s193_s14 = int_to_ptr.vmem [resolvable:$true] %s192_s14 }
  0x12   : > { %s1437_s23 = smov [#allocation8]   ;;  %s1850_s27 = smov 128  }
  0x13   : > { %1108 = dma.hbm_to_vmem [thread:$0]  (!%p1523_p10), %s176_s28, 4096, %s178_s6, [#allocation6], %s1434_s11, %s1434_s11, %s1435_s12  }
  0x14   : > { %1111 = dma.hbm_to_vmem [thread:$0]  (!%p1523_p10), %s191_s10, 32, %s193_s14, [#allocation6]  }
  0x15   : > { %s203_s26 = sshll.u32 %s1437_s23, 4  ;;  %s1439_s28 = smov 8   ;;  %s204_s26 = int_to_ptr.vmem [resolvable:$true] %s203_s26 }
  0x16   : > { %1114 = dma.hbm_to_vmem [thread:$0]  (!%p1523_p10), %s202_s17, 4096, %s204_s26, [#allocation9], %s1850_s27, %s1850_s27, %s1439_s28  }
  0x17   : > { %s1543_s30 = sadd.s32 1, %s1431_s21   ;;  %s30_s8 = sadd.s32 1, %s1427_s20 }
  0x18   : > { %s27_s6 = ssub.s32 %s1431_s21, %s1543_s30  ;;  %p37_p12 = scmp.ne.s32.totalorder %s1427_s20, %s1423_s19 }
  0x19   : > { %p28_p11 = scmp.eq.s32.totalorder %s27_s6, 0  ;;  %p38_p13 = scmp.eq.s32.totalorder %s1431_s21, 0 }
  0x1a   : > { %p1556_p0 = por %p151_p2, %p37_p12  ;;  %p1126_p3 = scmp.lt.s32.totalorder %s1431_s21, 4 }
  0x1b   : > { %s1552_s9 = scalar_select %p28_p11, %s1427_s20, %s30_s8  }
  0x1c   : > { %s220_s7 = sand.u32 1, %s1427_s20   ;;  %s1087_s11 = sshll.u32 %s1431_s21, 7 }
  0x1d   : > { %p39_p5 = por %p38_p13, %p37_p12  ;;  %s1073_s12 = sshll.u32 %s220_s7, 7 }
  0x1e   : > { %s229_s15 = scalar_lea.hbm %s1844_s0, %s1087_s11  ;;  %s224_s17 = scalar_lea.vmem [#allocation2], %s1073_s12 }
  0x1f   : > { %s230_s16 = sshll.u32 %s229_s15, 4  ;;  %s232_s23 = sshll.u32 %s224_s17, 4  ;;  %s231_s16 = int_to_ptr.hbm [resolvable:$true] %s230_s16  ;;  %s233_s23 = int_to_ptr.vmem [resolvable:$true] %s232_s23 }
  0x20   : > { %p1566_p7 = pnand %p1126_p3, %p39_p5  ;;  %s221_s6 = scalar_lea.sflag [#allocation3], %s220_s7 }
  0x21   : > { %s1327_s8 = sshra.s32 %s231_s16, 4  ;;  %s1334_s12 = scalar_lea.hbm %s1844_s0, 512  ;;  %s1328_s8 = int_to_ptr.hbm [resolvable:$true] %s1327_s8 }
  0x22   : > { %s1329_s27 = scalar_lea.hbm %s1328_s8, 128  ;;  %p1331_p9 = pneg %p1566_p7 }
  0x23   : > { %p1330_p2 = scmp.ne.s32.totalorder %s1328_s8, %s1329_s27  ;;  %p1335_p12 = scmp.lt.s32.totalorder %s1328_s8, %s1844_s0 }
  0x24   : > { %p1336_p13 = scmp.lt.s32.totalorder %s1334_s12, %s1329_s27 }
  0x25   : > { %p1332_p10 = pnand %p1331_p9, %p1330_p2 }
  0x26   : > { %p1337_p3 = por %p1336_p13, %p1335_p12 }
  0x27   : > { %p1333_p11 = pneg %p1332_p10 }
  0x29   : > { %p1338_p5 = pnand %p1337_p3, %p1333_p11 }
  0x2b   : > { %1341 = shalt.err (!%p1338_p5)
}
  0x2c   : > { %s1857_s7 = smov 128   ;;  %244 = sbr.rel (%p1515_p8) target bundleno = 495 (0x1ef), region = 40 }
  0x2d   : > { %1118 = dma.hbm_to_vmem [thread:$0]  (!%p1566_p7), %s231_s16, 2048, %s233_s23, %s221_s6, %s1857_s7, %s1857_s7, %s1439_s28  }
  0x2e   : > { %s1586_s17 = sand.u32 (!%p1515_p8), 1, %s1423_s19  }
  0x2f   : > { %s1077_s27 = sshll.u32 (!%p1515_p8), %s1586_s17, 7  ;;  %s247_s8 = scalar_lea.sflag (!%p1515_p8), [#allocation3], %s1586_s17 }
  0x30   : > { %s1592_s11 = scalar_lea.vmem (!%p1515_p8), [#allocation2], %s1077_s27 }
  0x31   : > { %1402 = dma.done.wait (%p1502_p4), %s247_s8, 2048  }
  0x32   : > { %1404 = vsyncadd (%p1502_p4), %s247_s8, 4294965248 }
  0x33   : > { %1406 = dma.done.wait (%p44_p1), [#allocation6], 4128  }
  0x34   : > { %1408 = vsyncadd (%p44_p1), [#allocation6], 4294963168 }
  0x35   : > { %1410 = dma.done.wait (%p44_p1), [#allocation9], 4096  }
  0x36   : > { %1412 = vsyncadd (%p44_p1), [#allocation9], 4294963200  ;;  %v341_v0 = vld [vmem:[#allocation5 + $0xf0] sm:$0xff]  ;;  %v342_v1 = vld [vmem:[#allocation5 + $0xf8] sm:$0xff]  ;;  %s1778_s28 = scalar_lea.vmem [#allocation10], %s1077_s27  ;;  %s1088_s16 = sshll.u32 %s1493_s22, 7 }
  0x37   : > { %v339_v2 = vld [vmem:[#allocation5 + $0xe0] sm:$0xff]  ;;  %349 = vmatpush.msra.mxu0 %v341_v0  ;;  %414 = vmatpush.msra.mxu1 %v342_v1  ;;  %v340_v3 = vld [vmem:[#allocation5 + $0xe8] sm:$0xff]  ;;  %v337_v4 = vld [vmem:[#allocation5 + $0xd0] sm:$0xff]  ;;  %s961_s6 = scalar_lea.hbm %s1849_s5, %s1088_s16  ;;  %s962_s13 = sshll.u32 %s1778_s28, 4  ;;  %s963_s13 = int_to_ptr.vmem [resolvable:$true] %s962_s13 }
  0x38   : > { %v338_v5 = vld [vmem:[#allocation5 + $0xd8] sm:$0xff]  ;;  %v335_v6 = vld [vmem:[#allocation5 + $0xc0] sm:$0xff]  ;;  %v336_v7 = vld [vmem:[#allocation5 + $0xc8] sm:$0xff]  ;;  %s964_s12 = sshll.u32 %s961_s6, 4  ;;  %s950_s14 = scalar_lea.sflag [#allocation4], %s1586_s17  ;;  %s965_s12 = int_to_ptr.hbm [resolvable:$true] %s964_s12 }
  0x39   : > { %350 = vmatpush.msra.mxu0 %v339_v2  ;;  %415 = vmatpush.msra.mxu1 %v340_v3  ;;  %v333_v8 = vld [vmem:[#allocation5 + $0xb0] sm:$0xff]  ;;  %v334_v9 = vld [vmem:[#allocation5 + $0xb8] sm:$0xff]  ;;  %v331_v10 = vld [vmem:[#allocation5 + $0xa0] sm:$0xff]  ;;  %s1371_s15 = sshra.s32 %s965_s12, 4  ;;  %s1377_s8 = scalar_lea.hbm %s1849_s5, 512  ;;  %s1372_s15 = int_to_ptr.hbm [resolvable:$true] %s1371_s15 }
  0x3a   : > { %v332_v11 = vld [vmem:[#allocation5 + $0xa8] sm:$0xff]  ;;  %v329_v12 = vld [vmem:[#allocation5 + $0x90] sm:$0xff]  ;;  %v330_v13 = vld [vmem:[#allocation5 + $0x98] sm:$0xff]  ;;  %s1373_s22 = scalar_lea.hbm %s1372_s15, 128  ;;  %p1378_p7 = scmp.lt.s32.totalorder %s1372_s15, %s1849_s5 }
  0x3b   : > { %351 = vmatpush.msra.mxu0 %v337_v4  ;;  %416 = vmatpush.msra.mxu1 %v338_v5  ;;  %v327_v14 = vld [vmem:[#allocation5 + $0x80] sm:$0xff]  ;;  %v328_v15 = vld [vmem:[#allocation5 + $0x88] sm:$0xff]  ;;  %v325_v16 = vld [vmem:[#allocation5 + $0x70] sm:$0xff]  ;;  %p1374_p1 = scmp.ne.s32.totalorder %s1372_s15, %s1373_s22  ;;  %p1379_p2 = scmp.lt.s32.totalorder %s1377_s8, %s1373_s22 }
  0x3c   : > { %v326_v17 = vld [vmem:[#allocation5 + $0x78] sm:$0xff]  ;;  %v323_v18 = vld [vmem:[#allocation5 + $0x60] sm:$0xff]  ;;  %v324_v19 = vld [vmem:[#allocation5 + $0x68] sm:$0xff] }
  0x3d   : > { %352 = vmatpush.msra.mxu0 %v335_v6  ;;  %417 = vmatpush.msra.mxu1 %v336_v7  ;;  %v321_v20 = vld [vmem:[#allocation5 + $0x50] sm:$0xff]  ;;  %v322_v21 = vld [vmem:[#allocation5 + $0x58] sm:$0xff]  ;;  %v319_v22 = vld [vmem:[#allocation5 + $0x40] sm:$0xff]  ;;  %p1375_p4 = pnand %p1374_p1, %p1556_p0  ;;  %p1380_p9 = por %p1379_p2, %p1378_p7 }
  0x3e   : > { %v320_v23 = vld [vmem:[#allocation5 + $0x48] sm:$0xff]  ;;  %v317_v24 = vld [vmem:[#allocation5 + $0x30] sm:$0xff]  ;;  %v318_v25 = vld [vmem:[#allocation5 + $0x38] sm:$0xff] }
  0x3f   : > { %353 = vmatpush.msra.mxu0 %v333_v8  ;;  %418 = vmatpush.msra.mxu1 %v334_v9  ;;  %v315_v26 = vld [vmem:[#allocation5 + $0x20] sm:$0xff]  ;;  %v316_v27 = vld [vmem:[#allocation5 + $0x28] sm:$0xff]  ;;  %v313_v28 = vld [vmem:[#allocation5 + $0x10] sm:$0xff]  ;;  %p1376_p8 = pneg %p1375_p4 }
  0x40   : > { %v314_v29 = vld [vmem:[#allocation5 + $0x18] sm:$0xff]  ;;  %v311_v30 = vld [vmem:[#allocation5] sm:$0xff]  ;;  %v312_v31 = vld [vmem:[#allocation5 + $0x8] sm:$0xff] }
  0x41   : > { %354 = vmatpush.msra.mxu0 %v331_v10  ;;  %419 = vmatpush.msra.mxu1 %v332_v11  ;;  %v295_v32 = vld [vmem:[%s1592_s11] sm:$0xff]  ;;  %v296_v33 = vld [vmem:[%s1592_s11 + $0x8] sm:$0xff]  ;;  %v297_v34 = vld [vmem:[%s1592_s11 + $0x10] sm:$0xff]  ;;  %p1381_p10 = pnand %p1380_p9, %p1376_p8 }
  0x42   : > { %v298_v35 = vld [vmem:[%s1592_s11 + $0x18] sm:$0xff]  ;;  %v299_v36 = vld [vmem:[%s1592_s11 + $0x20] sm:$0xff]  ;;  %v300_v37 = vld [vmem:[%s1592_s11 + $0x28] sm:$0xff] }
  0x43   : > { %355 = vmatpush.msra.mxu0 %v329_v12  ;;  %420 = vmatpush.msra.mxu1 %v330_v13  ;;  %v301_v38 = vld [vmem:[%s1592_s11 + $0x30] sm:$0xff]  ;;  %v302_v39 = vld [vmem:[%s1592_s11 + $0x38] sm:$0xff]  ;;  %v303_v40 = vld [vmem:[%s1592_s11 + $0x40] sm:$0xff] }
  0x44   : > { %v304_v41 = vld [vmem:[%s1592_s11 + $0x48] sm:$0xff]  ;;  %v305_v42 = vld [vmem:[%s1592_s11 + $0x50] sm:$0xff]  ;;  %v782_v43 = vld [vmem:[#allocation8 + $0x78] sm:$0xff] }
  0x45   : > { %356 = vmatpush.msra.mxu0 %v327_v14  ;;  %421 = vmatpush.msra.mxu1 %v328_v15  ;;  %v798_v44 = vld [vmem:[#allocation8 + $0xf8] sm:$0xff]  ;;  %v781_v46 = vld [vmem:[#allocation8 + $0x70] sm:$0xff]  ;;  %v780_v48 = vld [vmem:[#allocation8 + $0x68] sm:$0xff] }
  0x46   : > { %803 = vmatpush.msra.mxu2 %v782_v43  ;;  %868 = vmatpush.msra.mxu3 %v798_v44  ;;  %v306_v45 = vld [vmem:[%s1592_s11 + $0x58] sm:$0xff]  ;;  %v796_v49 = vld [vmem:[#allocation8 + $0xe8] sm:$0xff]  ;;  %v779_v50 = vld [vmem:[#allocation8 + $0x60] sm:$0xff] }
  0x47   : > { %357 = vmatpush.msra.mxu0 %v325_v16  ;;  %422 = vmatpush.msra.mxu1 %v326_v17  ;;  %v797_v47 = vld [vmem:[#allocation8 + $0xf0] sm:$0xff]  ;;  %v795_v51 = vld [vmem:[#allocation8 + $0xe0] sm:$0xff]  ;;  %v778_v53 = vld [vmem:[#allocation8 + $0x58] sm:$0xff] }
  0x48   : > { %804 = vmatpush.msra.mxu2 %v781_v46  ;;  %869 = vmatpush.msra.mxu3 %v797_v47  ;;  %v307_v52 = vld [vmem:[%s1592_s11 + $0x60] sm:$0xff]  ;;  %v777_v55 = vld [vmem:[#allocation8 + $0x50] sm:$0xff]  ;;  %v776_v57 = vld [vmem:[#allocation8 + $0x48] sm:$0xff] }
  0x49   : > { %358 = vmatpush.msra.mxu0 %v323_v18  ;;  %423 = vmatpush.msra.mxu1 %v324_v19  ;;  %v794_v54 = vld [vmem:[#allocation8 + $0xd8] sm:$0xff]  ;;  %v793_v56 = vld [vmem:[#allocation8 + $0xd0] sm:$0xff]  ;;  %v792_v58 = vld [vmem:[#allocation8 + $0xc8] sm:$0xff] }
  0x4a   : > { %805 = vmatpush.msra.mxu2 %v780_v48  ;;  %870 = vmatpush.msra.mxu3 %v796_v49  ;;  %v775_v59 = vld [vmem:[#allocation8 + $0x40] sm:$0xff]  ;;  %v774_v62 = vld [vmem:[#allocation8 + $0x38] sm:$0xff]  ;;  %v773_v0 = vld [vmem:[#allocation8 + $0x30] sm:$0xff] }
  0x4b   : > { %359 = vmatpush.msra.mxu0 %v321_v20  ;;  %424 = vmatpush.msra.mxu1 %v322_v21  ;;  %v791_v60 = vld [vmem:[#allocation8 + $0xc0] sm:$0xff]  ;;  %v790_v63 = vld [vmem:[#allocation8 + $0xb8] sm:$0xff]  ;;  %v789_v1 = vld [vmem:[#allocation8 + $0xb0] sm:$0xff] }
  0x4c   : > { %806 = vmatpush.msra.mxu2 %v779_v50  ;;  %871 = vmatpush.msra.mxu3 %v795_v51  ;;  %v308_v61 = vld [vmem:[%s1592_s11 + $0x68] sm:$0xff]  ;;  %v309_v6 = vld [vmem:[%s1592_s11 + $0x70] sm:$0xff]  ;;  %v770_v7 = vld [vmem:[#allocation8 + $0x18] sm:$0xff] }
  0x4d   : > { %360 = vmatpush.msra.mxu0 %v319_v22  ;;  %425 = vmatpush.msra.mxu1 %v320_v23  ;;  %v772_v2 = vld [vmem:[#allocation8 + $0x28] sm:$0xff]  ;;  %v771_v4 = vld [vmem:[#allocation8 + $0x20] sm:$0xff]  ;;  %v786_v8 = vld [vmem:[#allocation8 + $0x98] sm:$0xff] }
  0x4e   : > { %807 = vmatpush.msra.mxu2 %v778_v53  ;;  %872 = vmatpush.msra.mxu3 %v794_v54  ;;  %v788_v3 = vld [vmem:[#allocation8 + $0xa8] sm:$0xff]  ;;  %v787_v5 = vld [vmem:[#allocation8 + $0xa0] sm:$0xff]  ;;  %v769_v9 = vld [vmem:[#allocation8 + $0x10] sm:$0xff] }
  0x4f   : > { %361 = vmatpush.msra.mxu0 %v317_v24  ;;  %426 = vmatpush.msra.mxu1 %v318_v25  ;;  %v785_v10 = vld [vmem:[#allocation8 + $0x90] sm:$0xff]  ;;  %v768_v11 = vld [vmem:[#allocation8 + $0x8] sm:$0xff]  ;;  %v767_v13 = vld [vmem:[#allocation8] sm:$0xff] }
  0x50   : > { %808 = vmatpush.msra.mxu2 %v777_v55  ;;  %873 = vmatpush.msra.mxu3 %v793_v56  ;;  %v784_v12 = vld [vmem:[#allocation8 + $0x88] sm:$0xff]  ;;  %v783_v14 = vld [vmem:[#allocation8 + $0x80] sm:$0xff]  ;;  %v310_v15 = vld [vmem:[%s1592_s11 + $0x78] sm:$0xff] }
  0x51   : > { %362 = vmatpush.msra.mxu0 %v315_v26  ;;  %427 = vmatpush.msra.mxu1 %v316_v27  ;;  %v343_v16 = vld [vmem:[#allocation7] sm:$0x3] }
  0x52   : > { %809 = vmatpush.msra.mxu2 %v776_v57  ;;  %874 = vmatpush.msra.mxu3 %v792_v58  ;;  %v1622_v17 = vperm.slane %v343_v16, 0  ;;  %v1624_v18 = vperm.slane %v343_v16, 1 }
  0x53   : > { %363 = vmatpush.msra.mxu0 %v313_v28  ;;  %428 = vmatpush.msra.mxu1 %v314_v29 }
  0x54   : > { %810 = vmatpush.msra.mxu2 %v775_v59  ;;  %875 = vmatpush.msra.mxu3 %v791_v60 }
  0x55   : > { %364 = vmatpush.msra.mxu0 %v311_v30  ;;  %429 = vmatpush.msra.mxu1 %v312_v31 }
  0x56   : > { %365 = vmatmul.f32.vlgmr.msra.gmra.mxu0 %v295_v32  ;;  %430 = vmatmul.f32.vlgmr.msra.gmra.mxu1 %v295_v32 }
  0x57   : > { %811 = vmatpush.msra.mxu2 %v774_v62  ;;  %876 = vmatpush.msra.mxu3 %v790_v63 }
  0x59   : > { %812 = vmatpush.msra.mxu2 %v773_v0  ;;  %877 = vmatpush.msra.mxu3 %v789_v1 }
  0x5b   : > { %813 = vmatpush.msra.mxu2 %v772_v2  ;;  %878 = vmatpush.msra.mxu3 %v788_v3 }
  0x5d   : > { %814 = vmatpush.msra.mxu2 %v771_v4  ;;  %879 = vmatpush.msra.mxu3 %v787_v5 }
  0x5e   : > { %368 = vmatmul.f32.gmra.mxu0 %v296_v33  ;;  %433 = vmatmul.f32.gmra.mxu1 %v296_v33 }
  0x5f   : > { %815 = vmatpush.msra.mxu2 %v770_v7  ;;  %880 = vmatpush.msra.mxu3 %v786_v8 }
  0x61   : > { %816 = vmatpush.msra.mxu2 %v769_v9  ;;  %881 = vmatpush.msra.mxu3 %v785_v10 }
  0x63   : > { %817 = vmatpush.msra.mxu2 %v768_v11  ;;  %882 = vmatpush.msra.mxu3 %v784_v12 }
  0x65   : > { %818 = vmatpush.msra.mxu2 %v767_v13  ;;  %883 = vmatpush.msra.mxu3 %v783_v14 }
  0x66   : > { %371 = vmatmul.f32.gmra.mxu0 %v297_v34  ;;  %436 = vmatmul.f32.gmra.mxu1 %v297_v34 }
  0x6e   : > { %374 = vmatmul.f32.gmra.mxu0 %v298_v35  ;;  %439 = vmatmul.f32.gmra.mxu1 %v298_v35 }
  0x76   : > { %377 = vmatmul.f32.gmra.mxu0 %v299_v36  ;;  %442 = vmatmul.f32.gmra.mxu1 %v299_v36 }
  0x7e   : > { %380 = vmatmul.f32.gmra.mxu0 %v300_v37  ;;  %445 = vmatmul.f32.gmra.mxu1 %v300_v37 }
  0x86   : > { %383 = vmatmul.f32.gmra.mxu0 %v301_v38  ;;  %448 = vmatmul.f32.gmra.mxu1 %v301_v38 }
  0x8e   : > { %386 = vmatmul.f32.gmra.mxu0 %v302_v39  ;;  %451 = vmatmul.f32.gmra.mxu1 %v302_v39 }
  0x96   : > { %389 = vmatmul.f32.gmra.mxu0 %v303_v40  ;;  %454 = vmatmul.f32.gmra.mxu1 %v303_v40 }
  0x9e   : > { %392 = vmatmul.f32.gmra.mxu0 %v304_v41  ;;  %457 = vmatmul.f32.gmra.mxu1 %v304_v41 }
  0xa6   : > { %395 = vmatmul.f32.gmra.mxu0 %v305_v42  ;;  %460 = vmatmul.f32.gmra.mxu1 %v305_v42 }
  0xae   : > { %398 = vmatmul.f32.gmra.mxu0 %v306_v45  ;;  %463 = vmatmul.f32.gmra.mxu1 %v306_v45 }
  0xb6   : > { %401 = vmatmul.f32.gmra.mxu0 %v307_v52  ;;  %466 = vmatmul.f32.gmra.mxu1 %v307_v52 }
  0xbe   : > { %404 = vmatmul.f32.gmra.mxu0 %v308_v61  ;;  %469 = vmatmul.f32.gmra.mxu1 %v308_v61 }
  0xc6   : > { %407 = vmatmul.f32.gmra.mxu0 %v309_v6  ;;  %472 = vmatmul.f32.gmra.mxu1 %v309_v6 }
  0xce   : > { %410 = vmatmul.f32.gmra.mxu0 %v310_v15  ;;  %475 = vmatmul.f32.gmra.mxu1 %v310_v15 }
  0xd3   : > { %v366_v19 = vpop.f32.mrf.mxu0  ;;  %v431_v20 = vpop.f32.mrf.mxu1 }
  0xd4   : > { %v367_v21 = vadd.f32 %v366_v19, %v1622_v17  ;;  %v432_v22 = vadd.f32 %v431_v20, %v1624_v18 }
  0xd6   : > { %v511_v23 = vmul.f32 0.044715, %v367_v21  ;;  %v512_v24 = vmul.f32 0.044715, %v432_v22  ;;  %v479_v53 = vmul.f32 0.5, %v367_v21  ;;  %v480_v57 = vmul.f32 0.5, %v432_v22 }
  0xd8   : > { %v543_v25 = vmul.f32 %v511_v23, %v367_v21  ;;  %v544_v26 = vmul.f32 %v512_v24, %v432_v22 }
  0xda   : > { %v575_v27 = vmul.f32 %v543_v25, %v367_v21  ;;  %v576_v28 = vmul.f32 %v544_v26, %v432_v22 }
  0xdb   : > { %v369_v29 = vpop.f32.mrf.mxu0  ;;  %v434_v30 = vpop.f32.mrf.mxu1 }
  0xdc   : > { %v370_v31 = vadd.f32 %v369_v29, %v1622_v17  ;;  %v435_v32 = vadd.f32 %v434_v30, %v1624_v18  ;;  %v607_v33 = vadd.f32 %v575_v27, %v367_v21  ;;  %v608_v34 = vadd.f32 %v576_v28, %v432_v22 }
  0xde   : > { %v639_v35 = vmul.f32 0.7978846, %v607_v33  ;;  %v640_v36 = vmul.f32 0.7978846, %v608_v34  ;;  %v513_v37 = vmul.f32 0.044715, %v370_v31 }
  0xdf   : > { %v514_v38 = vmul.f32 0.044715, %v435_v32  ;;  %v481_v13 = vmul.f32 0.5, %v370_v31  ;;  %v482_v15 = vmul.f32 0.5, %v435_v32 }
  0xe0   : > { %1173 = vtanh.f32 %v639_v35  ;;  %v545_v39 = vmul.f32 %v513_v37, %v370_v31 }
  0xe1   : > { %1175 = vtanh.f32 %v640_v36  ;;  %v546_v40 = vmul.f32 %v514_v38, %v435_v32 }
  0xe2   : > { %v577_v43 = vmul.f32 %v545_v39, %v370_v31 }
  0xe3   : > { %v372_v41 = vpop.f32.mrf.mxu0  ;;  %v437_v42 = vpop.f32.mrf.mxu1  ;;  %v578_v44 = vmul.f32 %v546_v40, %v435_v32 }
  0xe4   : > { %v373_v45 = vadd.f32 %v372_v41, %v1622_v17  ;;  %v438_v46 = vadd.f32 %v437_v42, %v1624_v18  ;;  %v609_v47 = vadd.f32 %v577_v43, %v370_v31 }
  0xe5   : > { %v610_v48 = vadd.f32 %v578_v44, %v435_v32 }
  0xe6   : > { %v1174_v49 = vpop.eup %1173  ;;  %v515_v50 = vmul.f32 0.044715, %v373_v45  ;;  %v516_v51 = vmul.f32 0.044715, %v438_v46  ;;  %v641_v55 = vmul.f32 0.7978846, %v609_v47 }
  0xe7   : > { %v1176_v52 = vpop.eup %1175  ;;  %v703_v54 = vadd.f32 1.0, %v1174_v49  ;;  %v642_v56 = vmul.f32 0.7978846, %v610_v48  ;;  %v483_v35 = vmul.f32 0.5, %v373_v45  ;;  %v484_v39 = vmul.f32 0.5, %v438_v46 }
  0xe8   : > { %v704_v58 = vadd.f32 1.0, %v1176_v52  ;;  %v547_v59 = vmul.f32 %v515_v50, %v373_v45  ;;  %v548_v60 = vmul.f32 %v516_v51, %v438_v46  ;;  %1177 = vtanh.f32 %v641_v55 }
  0xe9   : > { %v735_v61 = vmul.f32 %v703_v54, %v479_v53  ;;  %1179 = vtanh.f32 %v642_v56 }
  0xea   : > { %v736_v62 = vmul.f32 %v704_v58, %v480_v57  ;;  %v579_v63 = vmul.f32 %v547_v59, %v373_v45  ;;  %v580_v0 = vmul.f32 %v548_v60, %v438_v46 }
  0xeb   : > { %v375_v1 = vpop.f32.mrf.mxu0  ;;  %v440_v2 = vpop.f32.mrf.mxu1  ;;  %819 = vmatmul.f32.vlgmr.msra.gmra.mxu2 %v735_v61 }
  0xec   : > { %v376_v3 = vadd.f32 %v375_v1, %v1622_v17  ;;  %v1634_v4 = vadd.f32 %v440_v2, %v1624_v18  ;;  %884 = vmatmul.f32.vlgmr.msra.gmra.mxu3 %v736_v62  ;;  %v611_v5 = vadd.f32 %v579_v63, %v373_v45  ;;  %v612_v6 = vadd.f32 %v580_v0, %v438_v46 }
  0xee   : > { %v643_v7 = vmul.f32 0.7978846, %v611_v5  ;;  %v644_v8 = vmul.f32 0.7978846, %v612_v6  ;;  %v1178_v9 = vpop.eup %1177  ;;  %v517_v10 = vmul.f32 0.044715, %v376_v3 }
  0xef   : > { %v518_v11 = vmul.f32 0.044715, %v1634_v4  ;;  %v1180_v12 = vpop.eup %1179  ;;  %v705_v14 = vadd.f32 1.0, %v1178_v9  ;;  %v485_v59 = vmul.f32 0.5, %v376_v3  ;;  %v486_v61 = vmul.f32 0.5, %v1634_v4 }
  0xf0   : > { %1181 = vtanh.f32 %v643_v7  ;;  %v706_v16 = vadd.f32 1.0, %v1180_v12  ;;  %v549_v19 = vmul.f32 %v517_v10, %v376_v3 }
  0xf1   : > { %1183 = vtanh.f32 %v644_v8  ;;  %v550_v20 = vmul.f32 %v518_v11, %v1634_v4  ;;  %v737_v21 = vmul.f32 %v705_v14, %v481_v13 }
  0xf2   : > { %v738_v24 = vmul.f32 %v706_v16, %v482_v15  ;;  %v581_v25 = vmul.f32 %v549_v19, %v376_v3 }
  0xf3   : > { %v378_v22 = vpop.f32.mrf.mxu0  ;;  %v443_v23 = vpop.f32.mrf.mxu1  ;;  %v582_v26 = vmul.f32 %v550_v20, %v1634_v4  ;;  %822 = vmatmul.f32.gmra.mxu2 %v737_v21 }
  0xf4   : > { %v379_v27 = vadd.f32 %v378_v22, %v1622_v17  ;;  %v1641_v28 = vadd.f32 %v443_v23, %v1624_v18  ;;  %887 = vmatmul.f32.gmra.mxu3 %v738_v24  ;;  %v613_v29 = vadd.f32 %v581_v25, %v376_v3 }
  0xf5   : > { %v614_v30 = vadd.f32 %v582_v26, %v1634_v4 }
  0xf6   : > { %v1182_v31 = vpop.eup %1181  ;;  %v519_v32 = vmul.f32 0.044715, %v379_v27  ;;  %v520_v33 = vmul.f32 0.044715, %v1641_v28  ;;  %v645_v37 = vmul.f32 0.7978846, %v613_v29 }
  0xf7   : > { %v1184_v34 = vpop.eup %1183  ;;  %v707_v36 = vadd.f32 1.0, %v1182_v31  ;;  %v646_v38 = vmul.f32 0.7978846, %v614_v30  ;;  %v487_v15 = vmul.f32 0.5, %v379_v27  ;;  %v488_v21 = vmul.f32 0.5, %v1641_v28 }
  0xf8   : > { %v708_v40 = vadd.f32 1.0, %v1184_v34  ;;  %v551_v41 = vmul.f32 %v519_v32, %v379_v27  ;;  %v552_v42 = vmul.f32 %v520_v33, %v1641_v28  ;;  %1185 = vtanh.f32 %v645_v37 }
  0xf9   : > { %v739_v43 = vmul.f32 %v707_v36, %v483_v35  ;;  %1187 = vtanh.f32 %v646_v38 }
  0xfa   : > { %v740_v44 = vmul.f32 %v708_v40, %v484_v39  ;;  %v583_v47 = vmul.f32 %v551_v41, %v379_v27  ;;  %v584_v48 = vmul.f32 %v552_v42, %v1641_v28 }
  0xfb   : > { %v381_v49 = vpop.f32.mrf.mxu0  ;;  %v446_v50 = vpop.f32.mrf.mxu1  ;;  %825 = vmatmul.f32.gmra.mxu2 %v739_v43 }
  0xfc   : > { %v1648_v51 = vadd.f32 %v381_v49, %v1622_v17  ;;  %v1651_v45 = vadd.f32 %v446_v50, %v1624_v18  ;;  %v615_v46 = vadd.f32 %v583_v47, %v379_v27  ;;  %v616_v52 = vadd.f32 %v584_v48, %v1641_v28  ;;  %890 = vmatmul.f32.gmra.mxu3 %v740_v44 }
  0xfe   : > { %v647_v53 = vmul.f32 0.7978846, %v615_v46  ;;  %v648_v54 = vmul.f32 0.7978846, %v616_v52  ;;  %v1186_v55 = vpop.eup %1185  ;;  %v521_v56 = vmul.f32 0.044715, %v1648_v51 }
  0xff   : > { %v522_v57 = vmul.f32 0.044715, %v1651_v45  ;;  %v1188_v58 = vpop.eup %1187  ;;  %v709_v60 = vadd.f32 1.0, %v1186_v55  ;;  %v489_v41 = vmul.f32 0.5, %v1648_v51  ;;  %v490_v43 = vmul.f32 0.5, %v1651_v45 }
 0x100   : > { %1189 = vtanh.f32 %v647_v53  ;;  %v710_v62 = vadd.f32 1.0, %v1188_v58  ;;  %v553_v63 = vmul.f32 %v521_v56, %v1648_v51 }
 0x101   : > { %1191 = vtanh.f32 %v648_v54  ;;  %v554_v0 = vmul.f32 %v522_v57, %v1651_v45  ;;  %v741_v1 = vmul.f32 %v709_v60, %v485_v59 }
 0x102   : > { %v742_v6 = vmul.f32 %v710_v62, %v486_v61  ;;  %v585_v7 = vmul.f32 %v553_v63, %v1648_v51 }
 0x103   : > { %v384_v2 = vpop.f32.mrf.mxu0  ;;  %v449_v5 = vpop.f32.mrf.mxu1  ;;  %v586_v8 = vmul.f32 %v554_v0, %v1651_v45  ;;  %828 = vmatmul.f32.gmra.mxu2 %v741_v1 }
 0x104   : > { %v385_v3 = vadd.f32 %v384_v2, %v1622_v17  ;;  %v1663_v9 = vadd.f32 %v449_v5, %v1624_v18  ;;  %893 = vmatmul.f32.gmra.mxu3 %v742_v6  ;;  %v617_v4 = vadd.f32 %v585_v7, %v1648_v51 }
 0x105   : > { %v618_v10 = vadd.f32 %v586_v8, %v1651_v45 }
 0x106   : > { %v1190_v11 = vpop.eup %1189  ;;  %v523_v12 = vmul.f32 0.044715, %v385_v3  ;;  %v524_v13 = vmul.f32 0.044715, %v1663_v9  ;;  %v649_v19 = vmul.f32 0.7978846, %v617_v4 }
 0x107   : > { %v1192_v14 = vpop.eup %1191  ;;  %v711_v16 = vadd.f32 1.0, %v1190_v11  ;;  %v650_v20 = vmul.f32 0.7978846, %v618_v10  ;;  %v491_v61 = vmul.f32 0.5, %v385_v3  ;;  %v492_v1 = vmul.f32 0.5, %v1663_v9 }
 0x108   : > { %v712_v22 = vadd.f32 1.0, %v1192_v14  ;;  %v555_v23 = vmul.f32 %v523_v12, %v385_v3  ;;  %v556_v24 = vmul.f32 %v524_v13, %v1663_v9  ;;  %1193 = vtanh.f32 %v649_v19 }
 0x109   : > { %v743_v25 = vmul.f32 %v711_v16, %v487_v15  ;;  %1195 = vtanh.f32 %v650_v20 }
 0x10a   : > { %v744_v26 = vmul.f32 %v712_v22, %v488_v21  ;;  %v587_v29 = vmul.f32 %v555_v23, %v385_v3  ;;  %v588_v30 = vmul.f32 %v556_v24, %v1663_v9 }
 0x10b   : > { %v387_v31 = vpop.f32.mrf.mxu0  ;;  %v452_v32 = vpop.f32.mrf.mxu1  ;;  %831 = vmatmul.f32.gmra.mxu2 %v743_v25 }
 0x10c   : > { %v1672_v27 = vadd.f32 %v387_v31, %v1622_v17  ;;  %v1675_v33 = vadd.f32 %v452_v32, %v1624_v18  ;;  %v619_v28 = vadd.f32 %v587_v29, %v385_v3  ;;  %v620_v34 = vadd.f32 %v588_v30, %v1663_v9  ;;  %896 = vmatmul.f32.gmra.mxu3 %v744_v26 }
 0x10e   : > { %v651_v35 = vmul.f32 0.7978846, %v619_v28  ;;  %v652_v36 = vmul.f32 0.7978846, %v620_v34  ;;  %v1194_v37 = vpop.eup %1193  ;;  %v525_v38 = vmul.f32 0.044715, %v1672_v27 }
 0x10f   : > { %v526_v39 = vmul.f32 0.044715, %v1675_v33  ;;  %v1196_v40 = vpop.eup %1195  ;;  %v713_v42 = vadd.f32 1.0, %v1194_v37  ;;  %v493_v23 = vmul.f32 0.5, %v1672_v27  ;;  %v494_v25 = vmul.f32 0.5, %v1675_v33 }
 0x110   : > { %1197 = vtanh.f32 %v651_v35  ;;  %v714_v44 = vadd.f32 1.0, %v1196_v40  ;;  %v557_v47 = vmul.f32 %v525_v38, %v1672_v27 }
 0x111   : > { %1199 = vtanh.f32 %v652_v36  ;;  %v558_v48 = vmul.f32 %v526_v39, %v1675_v33  ;;  %v745_v49 = vmul.f32 %v713_v42, %v489_v41 }
 0x112   : > { %v746_v52 = vmul.f32 %v714_v44, %v490_v43  ;;  %v589_v53 = vmul.f32 %v557_v47, %v1672_v27 }
 0x113   : > { %v390_v50 = vpop.f32.mrf.mxu0  ;;  %v455_v46 = vpop.f32.mrf.mxu1  ;;  %v590_v54 = vmul.f32 %v558_v48, %v1675_v33  ;;  %834 = vmatmul.f32.gmra.mxu2 %v745_v49 }
 0x114   : > { %v391_v51 = vadd.f32 %v390_v50, %v1622_v17  ;;  %v1688_v55 = vadd.f32 %v455_v46, %v1624_v18  ;;  %899 = vmatmul.f32.gmra.mxu3 %v746_v52  ;;  %v621_v45 = vadd.f32 %v589_v53, %v1672_v27 }
 0x115   : > { %v622_v56 = vadd.f32 %v590_v54, %v1675_v33 }
 0x116   : > { %v1198_v57 = vpop.eup %1197  ;;  %v527_v58 = vmul.f32 0.044715, %v391_v51  ;;  %v528_v59 = vmul.f32 0.044715, %v1688_v55  ;;  %v653_v63 = vmul.f32 0.7978846, %v621_v45 }
 0x117   : > { %v1200_v60 = vpop.eup %1199  ;;  %v715_v62 = vadd.f32 1.0, %v1198_v57  ;;  %v654_v0 = vmul.f32 0.7978846, %v622_v56  ;;  %v495_v43 = vmul.f32 0.5, %v391_v51  ;;  %v496_v49 = vmul.f32 0.5, %v1688_v55 }
 0x118   : > { %v716_v2 = vadd.f32 1.0, %v1200_v60  ;;  %v559_v5 = vmul.f32 %v527_v58, %v391_v51  ;;  %v560_v6 = vmul.f32 %v528_v59, %v1688_v55  ;;  %1201 = vtanh.f32 %v653_v63 }
 0x119   : > { %v747_v7 = vmul.f32 %v715_v62, %v491_v61  ;;  %1203 = vtanh.f32 %v654_v0 }
 0x11a   : > { %v748_v8 = vmul.f32 %v716_v2, %v492_v1  ;;  %v591_v4 = vmul.f32 %v559_v5, %v391_v51  ;;  %v592_v10 = vmul.f32 %v560_v6, %v1688_v55 }
 0x11b   : > { %v393_v11 = vpop.f32.mrf.mxu0  ;;  %v458_v12 = vpop.f32.mrf.mxu1  ;;  %837 = vmatmul.f32.gmra.mxu2 %v747_v7 }
 0x11c   : > { %v1697_v3 = vadd.f32 %v393_v11, %v1622_v17  ;;  %v1700_v13 = vadd.f32 %v458_v12, %v1624_v18  ;;  %v623_v9 = vadd.f32 %v591_v4, %v391_v51  ;;  %v624_v14 = vadd.f32 %v592_v10, %v1688_v55  ;;  %902 = vmatmul.f32.gmra.mxu3 %v748_v8 }
 0x11e   : > { %v655_v15 = vmul.f32 0.7978846, %v623_v9  ;;  %v656_v16 = vmul.f32 0.7978846, %v624_v14  ;;  %v1202_v19 = vpop.eup %1201  ;;  %v529_v20 = vmul.f32 0.044715, %v1697_v3 }
 0x11f   : > { %v530_v21 = vmul.f32 0.044715, %v1700_v13  ;;  %v1204_v22 = vpop.eup %1203  ;;  %v717_v24 = vadd.f32 1.0, %v1202_v19  ;;  %v497_v5 = vmul.f32 0.5, %v1697_v3  ;;  %v498_v7 = vmul.f32 0.5, %v1700_v13 }
 0x120   : > { %1205 = vtanh.f32 %v655_v15  ;;  %v718_v26 = vadd.f32 1.0, %v1204_v22  ;;  %v561_v29 = vmul.f32 %v529_v20, %v1697_v3 }
 0x121   : > { %1207 = vtanh.f32 %v656_v16  ;;  %v562_v30 = vmul.f32 %v530_v21, %v1700_v13  ;;  %v749_v31 = vmul.f32 %v717_v24, %v493_v23 }
 0x122   : > { %v750_v34 = vmul.f32 %v718_v26, %v494_v25  ;;  %v593_v35 = vmul.f32 %v561_v29, %v1697_v3 }
 0x123   : > { %v396_v32 = vpop.f32.mrf.mxu0  ;;  %v461_v28 = vpop.f32.mrf.mxu1  ;;  %v594_v36 = vmul.f32 %v562_v30, %v1700_v13  ;;  %840 = vmatmul.f32.gmra.mxu2 %v749_v31 }
 0x124   : > { %v397_v27 = vadd.f32 %v396_v32, %v1622_v17  ;;  %v1713_v37 = vadd.f32 %v461_v28, %v1624_v18  ;;  %905 = vmatmul.f32.gmra.mxu3 %v750_v34  ;;  %v625_v33 = vadd.f32 %v593_v35, %v1697_v3 }
 0x125   : > { %v626_v38 = vadd.f32 %v594_v36, %v1700_v13 }
 0x126   : > { %v1206_v39 = vpop.eup %1205  ;;  %v531_v40 = vmul.f32 0.044715, %v397_v27  ;;  %v532_v41 = vmul.f32 0.044715, %v1713_v37  ;;  %v657_v47 = vmul.f32 0.7978846, %v625_v33 }
 0x127   : > { %v1208_v42 = vpop.eup %1207  ;;  %v719_v44 = vadd.f32 1.0, %v1206_v39  ;;  %v658_v48 = vmul.f32 0.7978846, %v626_v38  ;;  %v499_v25 = vmul.f32 0.5, %v397_v27  ;;  %v500_v31 = vmul.f32 0.5, %v1713_v37 }
 0x128   : > { %v720_v50 = vadd.f32 1.0, %v1208_v42  ;;  %v563_v46 = vmul.f32 %v531_v40, %v397_v27  ;;  %v564_v52 = vmul.f32 %v532_v41, %v1713_v37  ;;  %1209 = vtanh.f32 %v657_v47 }
 0x129   : > { %v751_v53 = vmul.f32 %v719_v44, %v495_v43  ;;  %1211 = vtanh.f32 %v658_v48 }
 0x12a   : > { %v752_v54 = vmul.f32 %v720_v50, %v496_v49  ;;  %v595_v45 = vmul.f32 %v563_v46, %v397_v27  ;;  %v596_v56 = vmul.f32 %v564_v52, %v1713_v37 }
 0x12b   : > { %v399_v57 = vpop.f32.mrf.mxu0  ;;  %v464_v58 = vpop.f32.mrf.mxu1  ;;  %843 = vmatmul.f32.gmra.mxu2 %v751_v53 }
 0x12c   : > { %v1722_v51 = vadd.f32 %v399_v57, %v1622_v17  ;;  %v1725_v59 = vadd.f32 %v464_v58, %v1624_v18  ;;  %v627_v55 = vadd.f32 %v595_v45, %v397_v27  ;;  %v628_v60 = vadd.f32 %v596_v56, %v1713_v37  ;;  %908 = vmatmul.f32.gmra.mxu3 %v752_v54 }
 0x12e   : > { %v659_v61 = vmul.f32 0.7978846, %v627_v55  ;;  %v660_v62 = vmul.f32 0.7978846, %v628_v60  ;;  %v1210_v63 = vpop.eup %1209  ;;  %v533_v0 = vmul.f32 0.044715, %v1722_v51 }
 0x12f   : > { %v534_v1 = vmul.f32 0.044715, %v1725_v59  ;;  %v1212_v2 = vpop.eup %1211  ;;  %v721_v6 = vadd.f32 1.0, %v1210_v63  ;;  %v501_v46 = vmul.f32 0.5, %v1722_v51  ;;  %v502_v53 = vmul.f32 0.5, %v1725_v59 }
 0x130   : > { %1213 = vtanh.f32 %v659_v61  ;;  %v722_v8 = vadd.f32 1.0, %v1212_v2  ;;  %v565_v4 = vmul.f32 %v533_v0, %v1722_v51 }
 0x131   : > { %1215 = vtanh.f32 %v660_v62  ;;  %v566_v10 = vmul.f32 %v534_v1, %v1725_v59  ;;  %v753_v11 = vmul.f32 %v721_v6, %v497_v5 }
 0x132   : > { %v754_v14 = vmul.f32 %v722_v8, %v498_v7  ;;  %v597_v15 = vmul.f32 %v565_v4, %v1722_v51 }
 0x133   : > { %v402_v12 = vpop.f32.mrf.mxu0  ;;  %v467_v9 = vpop.f32.mrf.mxu1  ;;  %v598_v16 = vmul.f32 %v566_v10, %v1725_v59  ;;  %846 = vmatmul.f32.gmra.mxu2 %v753_v11 }
 0x134   : > { %v403_v3 = vadd.f32 %v402_v12, %v1622_v17  ;;  %v1738_v19 = vadd.f32 %v467_v9, %v1624_v18  ;;  %911 = vmatmul.f32.gmra.mxu3 %v754_v14  ;;  %v629_v13 = vadd.f32 %v597_v15, %v1722_v51 }
 0x135   : > { %v630_v20 = vadd.f32 %v598_v16, %v1725_v59 }
 0x136   : > { %v1214_v21 = vpop.eup %1213  ;;  %v535_v22 = vmul.f32 0.044715, %v403_v3  ;;  %v536_v23 = vmul.f32 0.044715, %v1738_v19  ;;  %v661_v29 = vmul.f32 0.7978846, %v629_v13 }
 0x137   : > { %v1216_v24 = vpop.eup %1215  ;;  %v723_v26 = vadd.f32 1.0, %v1214_v21  ;;  %v662_v30 = vmul.f32 0.7978846, %v630_v20  ;;  %v503_v7 = vmul.f32 0.5, %v403_v3  ;;  %v504_v11 = vmul.f32 0.5, %v1738_v19 }
 0x138   : > { %v724_v32 = vadd.f32 1.0, %v1216_v24  ;;  %v567_v28 = vmul.f32 %v535_v22, %v403_v3  ;;  %v568_v34 = vmul.f32 %v536_v23, %v1738_v19  ;;  %1217 = vtanh.f32 %v661_v29 }
 0x139   : > { %v755_v35 = vmul.f32 %v723_v26, %v499_v25  ;;  %1219 = vtanh.f32 %v662_v30 }
 0x13a   : > { %v756_v36 = vmul.f32 %v724_v32, %v500_v31  ;;  %v599_v33 = vmul.f32 %v567_v28, %v403_v3  ;;  %v600_v38 = vmul.f32 %v568_v34, %v1738_v19 }
 0x13b   : > { %v405_v39 = vpop.f32.mrf.mxu0  ;;  %v470_v40 = vpop.f32.mrf.mxu1  ;;  %849 = vmatmul.f32.gmra.mxu2 %v755_v35 }
 0x13c   : > { %v1747_v27 = vadd.f32 %v405_v39, %v1622_v17  ;;  %v1750_v41 = vadd.f32 %v470_v40, %v1624_v18  ;;  %v631_v37 = vadd.f32 %v599_v33, %v403_v3  ;;  %v632_v42 = vadd.f32 %v600_v38, %v1738_v19  ;;  %914 = vmatmul.f32.gmra.mxu3 %v756_v36 }
 0x13e   : > { %v663_v43 = vmul.f32 0.7978846, %v631_v37  ;;  %v664_v44 = vmul.f32 0.7978846, %v632_v42  ;;  %v1218_v47 = vpop.eup %1217  ;;  %v537_v48 = vmul.f32 0.044715, %v1747_v27 }
 0x13f   : > { %v538_v49 = vmul.f32 0.044715, %v1750_v41  ;;  %v1220_v50 = vpop.eup %1219  ;;  %v725_v52 = vadd.f32 1.0, %v1218_v47  ;;  %v505_v28 = vmul.f32 0.5, %v1747_v27  ;;  %v506_v35 = vmul.f32 0.5, %v1750_v41 }
 0x140   : > { %1221 = vtanh.f32 %v663_v43  ;;  %v726_v54 = vadd.f32 1.0, %v1220_v50  ;;  %v569_v45 = vmul.f32 %v537_v48, %v1747_v27 }
 0x141   : > { %1223 = vtanh.f32 %v664_v44  ;;  %v570_v56 = vmul.f32 %v538_v49, %v1750_v41  ;;  %v757_v57 = vmul.f32 %v725_v52, %v501_v46 }
 0x142   : > { %v758_v60 = vmul.f32 %v726_v54, %v502_v53  ;;  %v601_v61 = vmul.f32 %v569_v45, %v1747_v27 }
 0x143   : > { %v408_v58 = vpop.f32.mrf.mxu0  ;;  %v473_v55 = vpop.f32.mrf.mxu1  ;;  %v602_v62 = vmul.f32 %v570_v56, %v1750_v41  ;;  %852 = vmatmul.f32.gmra.mxu2 %v757_v57 }
 0x144   : > { %v409_v51 = vadd.f32 %v408_v58, %v1622_v17  ;;  %v474_v63 = vadd.f32 %v473_v55, %v1624_v18  ;;  %917 = vmatmul.f32.gmra.mxu3 %v758_v60  ;;  %v633_v59 = vadd.f32 %v601_v61, %v1747_v27  ;;  %v1773_v61 = vld [vmem:[%s1848_s4] ss:$0 sm:$0xff] }
 0x145   : > { %v634_v0 = vadd.f32 %v602_v62, %v1750_v41 }
 0x146   : > { %v1222_v1 = vpop.eup %1221  ;;  %v539_v2 = vmul.f32 0.044715, %v409_v51  ;;  %v540_v5 = vmul.f32 0.044715, %v474_v63  ;;  %v665_v4 = vmul.f32 0.7978846, %v633_v59 }
 0x147   : > { %v1224_v6 = vpop.eup %1223  ;;  %v727_v8 = vadd.f32 1.0, %v1222_v1  ;;  %v666_v10 = vmul.f32 0.7978846, %v634_v0  ;;  %v507_v47 = vmul.f32 0.5, %v409_v51  ;;  %v508_v41 = vmul.f32 0.5, %v474_v63 }
 0x148   : > { %v728_v12 = vadd.f32 1.0, %v1224_v6  ;;  %v571_v9 = vmul.f32 %v539_v2, %v409_v51  ;;  %v572_v14 = vmul.f32 %v540_v5, %v474_v63  ;;  %1225 = vtanh.f32 %v665_v4 }
 0x149   : > { %v759_v15 = vmul.f32 %v727_v8, %v503_v7  ;;  %1227 = vtanh.f32 %v666_v10 }
 0x14a   : > { %v760_v16 = vmul.f32 %v728_v12, %v504_v11  ;;  %v603_v13 = vmul.f32 %v571_v9, %v409_v51  ;;  %v604_v20 = vmul.f32 %v572_v14, %v474_v63 }
 0x14b   : > { %v411_v21 = vpop.f32.mrf.mxu0  ;;  %v476_v22 = vpop.f32.mrf.mxu1  ;;  %855 = vmatmul.f32.gmra.mxu2 %v759_v15 }
 0x14c   : > { %v412_v23 = vadd.f32 %v411_v21, %v1622_v17  ;;  %v477_v3 = vadd.f32 %v476_v22, %v1624_v18  ;;  %v635_v24 = vadd.f32 %v603_v13, %v409_v51  ;;  %v636_v25 = vadd.f32 %v604_v20, %v474_v63  ;;  %920 = vmatmul.f32.gmra.mxu3 %v760_v16 }
 0x14e   : > { %v667_v19 = vmul.f32 0.7978846, %v635_v24  ;;  %v668_v26 = vmul.f32 0.7978846, %v636_v25  ;;  %v1226_v29 = vpop.eup %1225  ;;  %v541_v30 = vmul.f32 0.044715, %v412_v23 }
 0x14f   : > { %v542_v31 = vmul.f32 0.044715, %v477_v3  ;;  %v1228_v32 = vpop.eup %1227  ;;  %v729_v34 = vadd.f32 1.0, %v1226_v29  ;;  %v509_v45 = vmul.f32 0.5, %v412_v23  ;;  %v510_v57 = vmul.f32 0.5, %v477_v3 }
 0x150   : > { %1229 = vtanh.f32 %v667_v19  ;;  %v730_v36 = vadd.f32 1.0, %v1228_v32  ;;  %v573_v17 = vmul.f32 %v541_v30, %v412_v23 }
 0x151   : > { %1231 = vtanh.f32 %v668_v26  ;;  %v574_v18 = vmul.f32 %v542_v31, %v477_v3  ;;  %v761_v33 = vmul.f32 %v729_v34, %v505_v28 }
 0x152   : > { %v762_v38 = vmul.f32 %v730_v36, %v506_v35  ;;  %v605_v39 = vmul.f32 %v573_v17, %v412_v23 }
 0x153   : > { %v606_v40 = vmul.f32 %v574_v18, %v477_v3  ;;  %858 = vmatmul.f32.gmra.mxu2 %v761_v33 }
 0x154   : > { %923 = vmatmul.f32.gmra.mxu3 %v762_v38  ;;  %v637_v37 = vadd.f32 %v605_v39, %v412_v23 }
 0x155   : > { %v638_v42 = vadd.f32 %v606_v40, %v477_v3 }
 0x156   : > { %v1230_v43 = vpop.eup %1229  ;;  %v669_v48 = vmul.f32 0.7978846, %v637_v37 }
 0x157   : > { %v1232_v44 = vpop.eup %1231  ;;  %v731_v27 = vadd.f32 1.0, %v1230_v43  ;;  %v670_v49 = vmul.f32 0.7978846, %v638_v42 }
 0x158   : > { %v732_v50 = vadd.f32 1.0, %v1232_v44  ;;  %1233 = vtanh.f32 %v669_v48 }
 0x159   : > { %v763_v46 = vmul.f32 %v731_v27, %v507_v47  ;;  %1235 = vtanh.f32 %v670_v49 }
 0x15a   : > { %v764_v52 = vmul.f32 %v732_v50, %v508_v41 }
 0x15b   : > { %861 = vmatmul.f32.gmra.mxu2 %v763_v46 }
 0x15c   : > { %926 = vmatmul.f32.gmra.mxu3 %v764_v52 }
 0x15e   : > { %v1234_v53 = vpop.eup %1233 }
 0x15f   : > { %v1236_v54 = vpop.eup %1235  ;;  %v733_v56 = vadd.f32 1.0, %v1234_v53 }
 0x160   : > { %v734_v58 = vadd.f32 1.0, %v1236_v54 }
 0x161   : > { %v765_v55 = vmul.f32 %v733_v56, %v509_v45 }
 0x162   : > { %v766_v60 = vmul.f32 %v734_v58, %v510_v57 }
 0x163   : > { %864 = vmatmul.f32.gmra.mxu2 %v765_v55 }
 0x164   : > { %929 = vmatmul.f32.gmra.mxu3 %v766_v60 }
 0x16e   : > { %v820_v62 = vpop.f32.mrf.mxu2 }
 0x16f   : > { %v821_v51 = vadd.f32 %v1773_v61, %v820_v62  ;;  %v885_v63 = vpop.f32.mrf.mxu3 }
 0x171   : > { %v886_v59 = vadd.f32 %v885_v63, %v821_v51 }
 0x173   : > { %933 = vst [vmem:[%s1778_s28] sm:$0xff] %v886_v59 }
 0x176   : > { %v823_v0 = vpop.f32.mrf.mxu2 }
 0x177   : > { %v824_v1 = vadd.f32 %v1773_v61, %v823_v0  ;;  %v888_v2 = vpop.f32.mrf.mxu3 }
 0x179   : > { %v889_v5 = vadd.f32 %v888_v2, %v824_v1 }
 0x17b   : > { %934 = vst [vmem:[%s1778_s28 + $0x8] sm:$0xff] %v889_v5 }
 0x17e   : > { %v826_v6 = vpop.f32.mrf.mxu2 }
 0x17f   : > { %v827_v7 = vadd.f32 %v1773_v61, %v826_v6  ;;  %v891_v8 = vpop.f32.mrf.mxu3 }
 0x181   : > { %v892_v4 = vadd.f32 %v891_v8, %v827_v7 }
 0x183   : > { %935 = vst [vmem:[%s1778_s28 + $0x10] sm:$0xff] %v892_v4 }
 0x186   : > { %v829_v10 = vpop.f32.mrf.mxu2 }
 0x187   : > { %v830_v11 = vadd.f32 %v1773_v61, %v829_v10  ;;  %v894_v12 = vpop.f32.mrf.mxu3 }
 0x189   : > { %v895_v9 = vadd.f32 %v894_v12, %v830_v11 }
 0x18b   : > { %936 = vst [vmem:[%s1778_s28 + $0x18] sm:$0xff] %v895_v9 }
 0x18e   : > { %v832_v14 = vpop.f32.mrf.mxu2 }
 0x18f   : > { %v833_v15 = vadd.f32 %v1773_v61, %v832_v14  ;;  %v897_v16 = vpop.f32.mrf.mxu3 }
 0x191   : > { %v898_v13 = vadd.f32 %v897_v16, %v833_v15 }
 0x193   : > { %937 = vst [vmem:[%s1778_s28 + $0x20] sm:$0xff] %v898_v13 }
 0x196   : > { %v835_v20 = vpop.f32.mrf.mxu2 }
 0x197   : > { %v836_v21 = vadd.f32 %v1773_v61, %v835_v20  ;;  %v900_v22 = vpop.f32.mrf.mxu3 }
 0x199   : > { %v901_v23 = vadd.f32 %v900_v22, %v836_v21 }
 0x19b   : > { %938 = vst [vmem:[%s1778_s28 + $0x28] sm:$0xff] %v901_v23 }
 0x19e   : > { %v838_v3 = vpop.f32.mrf.mxu2 }
 0x19f   : > { %v839_v24 = vadd.f32 %v1773_v61, %v838_v3  ;;  %v903_v25 = vpop.f32.mrf.mxu3 }
 0x1a1   : > { %v904_v19 = vadd.f32 %v903_v25, %v839_v24 }
 0x1a3   : > { %939 = vst [vmem:[%s1778_s28 + $0x30] sm:$0xff] %v904_v19 }
 0x1a6   : > { %v841_v26 = vpop.f32.mrf.mxu2 }
 0x1a7   : > { %v842_v29 = vadd.f32 %v1773_v61, %v841_v26  ;;  %v906_v30 = vpop.f32.mrf.mxu3 }
 0x1a9   : > { %v907_v31 = vadd.f32 %v906_v30, %v842_v29 }
 0x1ab   : > { %940 = vst [vmem:[%s1778_s28 + $0x38] sm:$0xff] %v907_v31 }
 0x1ae   : > { %v844_v32 = vpop.f32.mrf.mxu2 }
 0x1af   : > { %v845_v28 = vadd.f32 %v1773_v61, %v844_v32  ;;  %v909_v34 = vpop.f32.mrf.mxu3 }
 0x1b1   : > { %v910_v35 = vadd.f32 %v909_v34, %v845_v28 }
 0x1b3   : > { %941 = vst [vmem:[%s1778_s28 + $0x40] sm:$0xff] %v910_v35 }
 0x1b6   : > { %v847_v36 = vpop.f32.mrf.mxu2 }
 0x1b7   : > { %v848_v17 = vadd.f32 %v1773_v61, %v847_v36  ;;  %v912_v18 = vpop.f32.mrf.mxu3 }
 0x1b9   : > { %v913_v33 = vadd.f32 %v912_v18, %v848_v17 }
 0x1bb   : > { %942 = vst [vmem:[%s1778_s28 + $0x48] sm:$0xff] %v913_v33 }
 0x1be   : > { %v850_v38 = vpop.f32.mrf.mxu2 }
 0x1bf   : > { %v851_v39 = vadd.f32 %v1773_v61, %v850_v38  ;;  %v915_v40 = vpop.f32.mrf.mxu3 }
 0x1c1   : > { %v916_v37 = vadd.f32 %v915_v40, %v851_v39 }
 0x1c3   : > { %943 = vst [vmem:[%s1778_s28 + $0x50] sm:$0xff] %v916_v37 }
 0x1c6   : > { %v853_v42 = vpop.f32.mrf.mxu2 }
 0x1c7   : > { %v854_v43 = vadd.f32 %v1773_v61, %v853_v42  ;;  %v918_v44 = vpop.f32.mrf.mxu3 }
 0x1c9   : > { %v919_v47 = vadd.f32 %v918_v44, %v854_v43 }
 0x1cb   : > { %944 = vst [vmem:[%s1778_s28 + $0x58] sm:$0xff] %v919_v47 }
 0x1ce   : > { %v856_v27 = vpop.f32.mrf.mxu2 }
 0x1cf   : > { %v857_v48 = vadd.f32 %v1773_v61, %v856_v27  ;;  %v921_v49 = vpop.f32.mrf.mxu3 }
 0x1d1   : > { %v922_v41 = vadd.f32 %v921_v49, %v857_v48 }
 0x1d3   : > { %945 = vst [vmem:[%s1778_s28 + $0x60] sm:$0xff] %v922_v41 }
 0x1d6   : > { %v859_v50 = vpop.f32.mrf.mxu2 }
 0x1d7   : > { %v860_v46 = vadd.f32 %v1773_v61, %v859_v50  ;;  %v924_v52 = vpop.f32.mrf.mxu3 }
 0x1d9   : > { %v925_v53 = vadd.f32 %v924_v52, %v860_v46 }
 0x1db   : > { %946 = vst [vmem:[%s1778_s28 + $0x68] sm:$0xff] %v925_v53 }
 0x1de   : > { %v862_v54 = vpop.f32.mrf.mxu2 }
 0x1df   : > { %v863_v45 = vadd.f32 %v1773_v61, %v862_v54  ;;  %v927_v56 = vpop.f32.mrf.mxu3 }
 0x1e1   : > { %v928_v57 = vadd.f32 %v927_v56, %v863_v45 }
 0x1e3   : > { %947 = vst [vmem:[%s1778_s28 + $0x70] sm:$0xff] %v928_v57 }
 0x1e6   : > { %v865_v58 = vpop.f32.mrf.mxu2 }
 0x1e7   : > { %v866_v55 = vadd.f32 %v1773_v61, %v865_v58  ;;  %v930_v60 = vpop.f32.mrf.mxu3 }
 0x1e9   : > { %v931_v62 = vadd.f32 %v930_v60, %v866_v55 }
 0x1eb   : > { %948 = vst [vmem:[%s1778_s28 + $0x78] sm:$0xff] %v931_v62 }
 0x1ec   : > { %1384 = shalt.err (!%p1381_p10)
}
 0x1ed   : > { %s1440_s17 = smov 128   ;;  %s1441_s29 = smov 8  }
 0x1ee   : > { %1103 = dma.vmem_to_hbm [thread:$0]  (%p1556_p0), %s963_s13, 2048, %s965_s12, %s950_s14, %s1440_s17, %s1440_s17, %s1441_s29  }
 0x1ef PF: > { %p1130_p11 = scmp.ge.s32.totalorder %s1431_s21, 2  ;;  %s979_s28 = sand.u32 1, %s1419_s18  }
 0x1f0   : > { %s980_s16 = scalar_lea.sflag [#allocation4], %s979_s28 }
 0x1f1   : > { %p1120_p12 = pnand %p1130_p11, %p1507_p6 }
 0x1f3   : > { %p1121_p13 = pneg %p1120_p12 }
 0x1f5   : > { %1414 = dma.done.wait (%p1121_p13), %s980_s16, 2048  }
 0x1f6   : > { %1416 = vsyncadd (%p1121_p13), %s980_s16, 4294965248  ;;  %p20_p3 = scmp.ge.s32.totalorder %s1543_s30, 6   ;;  %s1858_s18 = smov %s1423_s19 }
 0x1f7   : > { %s1859_s19 = smov %s1427_s20  ;;  %s1860_s20 = smov %s1552_s9 }
 0x1f8   : > { %s1861_s21 = smov %s1543_s30  ;;  %22 = sbr.rel (!%p20_p3) target bundleno = 7 (0x7), region = 97 }
 0x1fd   :  { %986 = vsyncpa [#allocation3], 1 }
 0x1fe   :  { %988 = vsyncpa [#allocation3 + $0x1], 1 }
 0x1ff   :  { %989 = vsyncpa [#allocation6], 1 }
 0x200   :  { %990 = vsyncpa [#allocation9], 1 }
 0x201   :  { %991 = vsyncpa [#allocation4], 1 }
 0x202   :  { %993 = vsyncpa [#allocation4 + $0x1], 1 }

</bundles_post_ra>
